<compile_context>
chip_gen: v7x
topology: tpu7x:2x2x1
jax: 0.10.0
libtpu: 0.0.40
codegen_flags: <defaults>
</compile_context>

<pallas_src>
import functools

import jax
import jax.numpy as jnp
from jax.experimental import pallas as pl
from jax.experimental.pallas import tpu as pltpu


def _attention_block_kernel(g_ref, x_ref, wg_ref, wx_ref, b_ref, wp_ref, bp_ref,
                            o_ref):
    """One (batch-element, spatial-tile) program of the fused attention block.

    g_ref : (1, Cg, T)  gating-signal tile (channels on sublanes, space on lanes)
    x_ref : (1, Cx, T)  skip-connection tile
    wg_ref: (Fi, Cg)    W_g 1x1x1 conv weight, BN folded in
    wx_ref: (Fi, Cx)    W_x 1x1x1 conv weight, BN folded in
    b_ref : (Fi, 1)     pre-summed folded biases of W_g and W_x
    wp_ref: (1, Fi)     psi 1x1x1 conv weight, BN folded in
    bp_ref: (1, 1)
    o_ref : (1, Cx, T)  out = x * sigmoid(psi)

    NOTE: in the ragged last spatial tile, out-of-bounds lanes hold garbage;
    that is fine because nothing here reduces across lanes and OOB stores are
    masked by Pallas.
    """
    x = x_ref[0]                                   # (Cx, T) in I/O dtype
    g32 = g_ref[0].astype(jnp.float32)
    x32 = x.astype(jnp.float32)

    # h = relu(BN(conv(g)) + BN(conv(x)))  with BN folded into w/b.
    h = jnp.maximum(
        jnp.dot(wg_ref[...], g32, preferred_element_type=jnp.float32)
        + jnp.dot(wx_ref[...], x32, preferred_element_type=jnp.float32)
        + b_ref[...],
        0.0)                                       # (Fi, T)

    # psi = sigmoid(BN(conv(h)))                    (1, T) -- sigmoid on the EUP.
    psi = jax.nn.sigmoid(
        jnp.dot(wp_ref[...], h, preferred_element_type=jnp.float32) + bp_ref[...])

    # out = x * psi  (psi broadcasts across the channel sublanes)
    o_ref[0] = (x32 * psi).astype(o_ref.dtype)


def _fold_bn(w, b, gamma, beta, mean, var, eps):
    """Fold inference-mode BatchNorm into a 1x1x1 conv: y = (s*W)@x + (s*b + t)."""
    s = (gamma / jnp.sqrt(var + eps)).astype(jnp.float32)
    w32 = w.astype(jnp.float32)
    b32 = b.astype(jnp.float32)
    return (w32 * s[:, None],
            s * b32 + (beta.astype(jnp.float32) - s * mean.astype(jnp.float32)))


def _pick_tile(Cg, Cx, S, N, itemsize, *, target_step_bytes=4 << 20,
               vmem_budget_bytes=24 << 20, max_tile=32768):
    """Pick the spatial (lane) tile.

    Big enough that each grid step moves ~target_step_bytes of HBM traffic
    (amortizes per-step overhead on this bandwidth-bound kernel); small enough
    that the double-buffered working set stays inside vmem_budget_bytes
    (sized against v7x's 64 MiB physical / 32 MiB scoped VMEM).
    """
    rows = Cg + 2 * Cx                      # streamed sublane rows per lane per step
    t = target_step_bytes // (rows * itemsize)
    t = min(t, vmem_budget_bytes // (2 * rows * itemsize))   # 2x double-buffer
    t = min(t, max_tile)
    t = max(512, (t // 512) * 512)          # multiple of the 128-lane vreg width
    s_ceil = -(-S // 128) * 128
    t = min(t, max(512, s_ceil))            # never bigger than the problem needs
    # v7x has 2 TensorCores: avoid a 1-step grid when the problem can be split.
    if N * (-(-S // t)) < 2 and S > 1024:
        t = max(512, (((S + 1) // 2) // 512) * 512)
    return int(t)


def attention_block_forward(g, x, params, *, eps=1e-5, tile=None):
    """Forward pass of Attention_block.

    g: (N, Cg, D, H, W)  gating signal      (PyTorch NCDHW)
    x: (N, Cx, D, H, W)  skip connection
    Returns (N, Cx, D, H, W) = x * sigmoid(psi(relu(W_g(g) + W_x(x)))),
    in x.dtype (f32 or bf16).
    """
    N, Cg, D, H, W = g.shape
    Nx, Cx, Dx, Hx, Wx = x.shape
    assert (N, D, H, W) == (Nx, Dx, Hx, Wx), "g and x must share batch/spatial dims"

    Fi = params["wg"].shape[0]
    wg = params["wg"].reshape(Fi, Cg)       # (Fi, Cg, 1, 1, 1) -> (Fi, Cg)
    wx = params["wx"].reshape(Fi, Cx)
    wp = params["wp"].reshape(1, Fi)

    # TODO(synk): BatchNorm3d is implemented in inference mode (running stats);
    # training-mode batch statistics are not computed inside the kernel.
    wg_f, bg_f = _fold_bn(wg, params["bg"], params["gamma_g"], params["beta_g"],
                          params["mean_g"], params["var_g"], eps)
    wx_f, bx_f = _fold_bn(wx, params["bx"], params["gamma_x"], params["beta_x"],
                          params["mean_x"], params["var_x"], eps)
    wp_f, bp_f = _fold_bn(wp, params["bp"], params["gamma_p"], params["beta_p"],
                          params["mean_p"], params["var_p"], eps)
    b_sum = (bg_f + bx_f).reshape(Fi, 1)    # pre-add the two stage-1 biases

    # Flatten the spatial volume onto the lane axis (free, contiguous reshape).
    S = D * H * W
    g2 = g.reshape(N, Cg, S)
    x2 = x.reshape(N, Cx, S)

    itemsize = jnp.dtype(x.dtype).itemsize
    if tile is None:
        tile = _pick_tile(Cg, Cx, S, N, itemsize)
    grid = (N, -(-S // tile))               # both axes independent -> megacore

    # Explicit scoped-VMEM limit: v5e defaults to only 16 MiB; keep <= 64 MiB
    # (v7x physical).  Working set is 2 buffers x (Cg+2Cx) x tile x itemsize.
    per_step_bytes = (Cg + 2 * Cx) * tile * itemsize
    vmem_limit = int(min(64 << 20, max(32 << 20, 4 * per_step_bytes)))

    cost = pl.CostEstimate(
        flops=int(2 * N * S * Fi * (Cg + Cx + 1)),
        transcendentals=int(N * S),
        bytes_accessed=int(itemsize * N * S * (Cg + 2 * Cx)
                           + 4 * (Fi * (Cg + Cx + 1) + Fi + 2)))

    out = pl.pallas_call(
        _attention_block_kernel,
        out_shape=jax.ShapeDtypeStruct((N, Cx, S), x.dtype),
        grid=grid,
        in_specs=[
            pl.BlockSpec((1, Cg, tile), lambda n, s: (n, 0, s)),
            pl.BlockSpec((1, Cx, tile), lambda n, s: (n, 0, s)),
            pl.BlockSpec((Fi, Cg), lambda n, s: (0, 0)),
            pl.BlockSpec((Fi, Cx), lambda n, s: (0, 0)),
            pl.BlockSpec((Fi, 1), lambda n, s: (0, 0)),
            pl.BlockSpec((1, Fi), lambda n, s: (0, 0)),
            pl.BlockSpec((1, 1), lambda n, s: (0, 0)),
        ],
        out_specs=pl.BlockSpec((1, Cx, tile), lambda n, s: (n, 0, s)),
        compiler_params=pltpu.CompilerParams(
            dimension_semantics=("parallel", "parallel"),
            vmem_limit_bytes=vmem_limit),
        cost_estimate=cost,
    )(g2, x2, wg_f, wx_f, b_sum, wp_f, bp_f.reshape(1, 1))

    return out.reshape(N, Cx, D, H, W)


def _reference_forward(g, x, params, eps=1e-5):
    """Pure-JAX reference (un-folded conv + BN) for correctness checking."""
    def conv_bn(inp, w, b, gamma, beta, mean, var):
        cout = w.shape[0]
        y = jnp.einsum("oi,nidhw->nodhw", w.reshape(cout, -1), inp)
        y = y + b[None, :, None, None, None]
        s = gamma / jnp.sqrt(var + eps)
        return (y * s[None, :, None, None, None]
                + (beta - s * mean)[None, :, None, None, None])

    g1 = conv_bn(g, params["wg"], params["bg"], params["gamma_g"],
                 params["beta_g"], params["mean_g"], params["var_g"])
    x1 = conv_bn(x, params["wx"], params["bx"], params["gamma_x"],
                 params["beta_x"], params["mean_x"], params["var_x"])
    h = jnp.maximum(g1 + x1, 0.0)
    psi = jax.nn.sigmoid(conv_bn(h, params["wp"], params["bp"], params["gamma_p"],
                                 params["beta_p"], params["mean_p"], params["var_p"]))
    return x * psi


def _make_params(key, Cg, Cx, Fi):
    keys = jax.random.split(key, 18)
    return {
        # W_g = Conv3d(Cg -> Fi, 1x1x1) + BN(Fi)
        "wg": 0.3 * jax.random.normal(keys[0], (Fi, Cg, 1, 1, 1), jnp.float32),
        "bg": 0.1 * jax.random.normal(keys[1], (Fi,), jnp.float32),
        "gamma_g": 1.0 + 0.1 * jax.random.normal(keys[2], (Fi,), jnp.float32),
        "beta_g": 0.1 * jax.random.normal(keys[3], (Fi,), jnp.float32),
        "mean_g": 0.1 * jax.random.normal(keys[4], (Fi,), jnp.float32),
        "var_g": jax.random.uniform(keys[5], (Fi,), jnp.float32, 0.5, 1.5),
        # W_x = Conv3d(Cx -> Fi, 1x1x1) + BN(Fi)
        "wx": 0.3 * jax.random.normal(keys[6], (Fi, Cx, 1, 1, 1), jnp.float32),
        "bx": 0.1 * jax.random.normal(keys[7], (Fi,), jnp.float32),
        "gamma_x": 1.0 + 0.1 * jax.random.normal(keys[8], (Fi,), jnp.float32),
        "beta_x": 0.1 * jax.random.normal(keys[9], (Fi,), jnp.float32),
        "mean_x": 0.1 * jax.random.normal(keys[10], (Fi,), jnp.float32),
        "var_x": jax.random.uniform(keys[11], (Fi,), jnp.float32, 0.5, 1.5),
        # psi = Conv3d(Fi -> 1, 1x1x1) + BN(1) + Sigmoid
        "wp": 0.3 * jax.random.normal(keys[12], (1, Fi, 1, 1, 1), jnp.float32),
        "bp": 0.1 * jax.random.normal(keys[13], (1,), jnp.float32),
        "gamma_p": 1.0 + 0.1 * jax.random.normal(keys[14], (1,), jnp.float32),
        "beta_p": 0.1 * jax.random.normal(keys[15], (1,), jnp.float32),
        "mean_p": 0.1 * jax.random.normal(keys[16], (1,), jnp.float32),
        "var_p": jax.random.uniform(keys[17], (1,), jnp.float32, 0.5, 1.5),
    }


if __name__ == "__main__":
    # Small deterministic example consistent with the module:
    #   batch=2, F_g=F_l=4 channels, F_int=8, spatial D=H=W=8.
    N, Cg, Cx, Fi = 2, 4, 4, 8
    D = H = W = 8

    key = jax.random.PRNGKey(0)
    kg, kx, kp, kg2, kx2 = jax.random.split(key, 5)

    g = jax.random.normal(kg, (N, Cg, D, H, W), dtype=jnp.float32)
    x = jax.random.normal(kx, (N, Cx, D, H, W), dtype=jnp.float32)
    params = _make_params(kp, Cg, Cx, Fi)

    fwd = jax.jit(functools.partial(attention_block_forward))
    out = fwd(g, x, params)
    jax.block_until_ready(out)

    ref = _reference_forward(g, x, params)
    assert out.shape == (N, Cx, D, H, W)
    assert out.dtype == x.dtype
    assert jnp.allclose(out, ref, atol=1e-4, rtol=1e-4), "mismatch vs reference (f32)"

    # Ragged spatial extent (S not a multiple of the tile) -- exercises the
    # masked last block now that the wrapper-side pad/slice is gone.
    Dr, Hr, Wr = 5, 7, 9                     # S = 315, tile=256 -> partial block
    gr = jax.random.normal(kg2, (1, Cg, Dr, Hr, Wr), dtype=jnp.float32)
    xr = jax.random.normal(kx2, (1, Cx, Dr, Hr, Wr), dtype=jnp.float32)
    out_r = attention_block_forward(gr, xr, params, tile=256)
    jax.block_until_ready(out_r)
    ref_r = _reference_forward(gr, xr, params)
    assert jnp.allclose(out_r, ref_r, atol=1e-4, rtol=1e-4), "mismatch (ragged S)"

    # bf16 I/O path (halves HBM traffic on this bandwidth-bound kernel).
    g_bf = g.astype(jnp.bfloat16)
    x_bf = x.astype(jnp.bfloat16)
    out_bf = attention_block_forward(g_bf, x_bf, params)
    jax.block_until_ready(out_bf)
    assert out_bf.dtype == jnp.bfloat16
    ref_bf = _reference_forward(g_bf.astype(jnp.float32),
                                x_bf.astype(jnp.float32), params)
    assert jnp.allclose(out_bf.astype(jnp.float32), ref_bf, atol=5e-2, rtol=5e-2), \
        "mismatch vs reference (bf16)"

    print("KERNEL_OK")
</pallas_src>

<mosaic_0001>
module attributes {stable_mosaic.version = 11 : i64} {
  func.func @_attention_block_kernel(%arg0: i32, %arg1: i32, %arg2: memref<1x4x512xf32, #tpu.memory_space<vmem>>, %arg3: memref<1x4x512xf32, #tpu.memory_space<vmem>>, %arg4: memref<8x4xf32, #tpu.memory_space<vmem>>, %arg5: memref<8x4xf32, #tpu.memory_space<vmem>>, %arg6: memref<8x1xf32, #tpu.memory_space<vmem>>, %arg7: memref<1x8xf32, #tpu.memory_space<vmem>>, %arg8: memref<1x1xf32, #tpu.memory_space<vmem>>, %arg9: memref<1x4x512xf32, #tpu.memory_space<vmem>>) attributes {dimension_semantics = [#tpu.dimension_semantics<parallel>, #tpu.dimension_semantics<parallel>], iteration_bounds = array<i64: 2, 1>, scalar_prefetch = 0 : i64, scratch_operands = 0 : i64, tpu.core_type = #tpu.core_type<tc>, window_params = [{transform_indices = @transform_0, window_bounds = array<i64: 1, 4, 512>}, {transform_indices = @transform_1, window_bounds = array<i64: 1, 4, 512>}, {pipeline_mode = #tpu.pipeline_mode<synchronous>, transform_indices = @transform_2, window_bounds = array<i64: 8, 4>}, {pipeline_mode = #tpu.pipeline_mode<synchronous>, transform_indices = @transform_3, window_bounds = array<i64: 8, 4>}, {pipeline_mode = #tpu.pipeline_mode<synchronous>, transform_indices = @transform_4, window_bounds = array<i64: 8, 1>}, {pipeline_mode = #tpu.pipeline_mode<synchronous>, transform_indices = @transform_5, window_bounds = array<i64: 1, 8>}, {pipeline_mode = #tpu.pipeline_mode<synchronous>, transform_indices = @transform_6, window_bounds = array<i64: 1, 1>}, {transform_indices = @transform_7, window_bounds = array<i64: 1, 4, 512>}]} {
    %c0 = arith.constant 0 : index
    %c0_0 = arith.constant 0 : index
    %c0_1 = arith.constant 0 : index
    %0 = vector.load %arg3[%c0, %c0_0, %c0_1] : memref<1x4x512xf32, #tpu.memory_space<vmem>>, vector<1x4x512xf32>
    %1 = vector.shape_cast %0 : vector<1x4x512xf32> to vector<4x512xf32>
    %c0_2 = arith.constant 0 : index
    %c0_3 = arith.constant 0 : index
    %c0_4 = arith.constant 0 : index
    %2 = vector.load %arg2[%c0_2, %c0_3, %c0_4] : memref<1x4x512xf32, #tpu.memory_space<vmem>>, vector<1x4x512xf32>
    %3 = vector.shape_cast %2 : vector<1x4x512xf32> to vector<4x512xf32>
    %c0_5 = arith.constant 0 : index
    %c0_6 = arith.constant 0 : index
    %4 = vector.load %arg4[%c0_5, %c0_6] : memref<8x4xf32, #tpu.memory_space<vmem>>, vector<8x4xf32>
    %cst = arith.constant dense<0.000000e+00> : vector<8x512xf32>
    %5 = tpu.matmul %4, %3, %cst {dimension_numbers = #tpu.dot_dimension_numbers<[1], [0], [0], [1], [0, 0, 1, 1], [], []>} : vector<8x4xf32>, vector<4x512xf32>, vector<8x512xf32> -> vector<8x512xf32>
    %c0_7 = arith.constant 0 : index
    %c0_8 = arith.constant 0 : index
    %6 = vector.load %arg5[%c0_7, %c0_8] : memref<8x4xf32, #tpu.memory_space<vmem>>, vector<8x4xf32>
    %cst_9 = arith.constant dense<0.000000e+00> : vector<8x512xf32>
    %7 = tpu.matmul %6, %1, %cst_9 {dimension_numbers = #tpu.dot_dimension_numbers<[1], [0], [0], [1], [0, 0, 1, 1], [], []>} : vector<8x4xf32>, vector<4x512xf32>, vector<8x512xf32> -> vector<8x512xf32>
    %8 = arith.addf %5, %7 : vector<8x512xf32>
    %c0_10 = arith.constant 0 : index
    %c0_11 = arith.constant 0 : index
    %9 = vector.load %arg6[%c0_10, %c0_11] : memref<8x1xf32, #tpu.memory_space<vmem>>, vector<8x1xf32>
    %10 = vector.broadcast %9 : vector<8x1xf32> to vector<8x512xf32>
    %11 = arith.addf %8, %10 : vector<8x512xf32>
    %cst_12 = arith.constant 0.000000e+00 : f32
    %12 = vector.broadcast %cst_12 : f32 to vector<8x512xf32>
    %13 = arith.maximumf %11, %12 : vector<8x512xf32>
    %c0_13 = arith.constant 0 : index
    %c0_14 = arith.constant 0 : index
    %14 = vector.load %arg7[%c0_13, %c0_14] : memref<1x8xf32, #tpu.memory_space<vmem>>, vector<1x8xf32>
    %cst_15 = arith.constant dense<0.000000e+00> : vector<1x512xf32>
    %15 = tpu.matmul %14, %13, %cst_15 {dimension_numbers = #tpu.dot_dimension_numbers<[1], [0], [0], [1], [0, 0, 1, 1], [], []>} : vector<1x8xf32>, vector<8x512xf32>, vector<1x512xf32> -> vector<1x512xf32>
    %c0_16 = arith.constant 0 : index
    %c0_17 = arith.constant 0 : index
    %16 = vector.load %arg8[%c0_16, %c0_17] : memref<1x1xf32, #tpu.memory_space<vmem>>, vector<1x1xf32>
    %17 = vector.broadcast %16 : vector<1x1xf32> to vector<1x512xf32>
    %18 = arith.addf %15, %17 : vector<1x512xf32>
    %19 = arith.negf %18 : vector<1x512xf32>
    %20 = math.exp %19 : vector<1x512xf32>
    %cst_18 = arith.constant 1.000000e+00 : f32
    %21 = vector.broadcast %cst_18 : f32 to vector<1x512xf32>
    %22 = arith.addf %21, %20 : vector<1x512xf32>
    %23 = arith.divf %21, %22 : vector<1x512xf32>
    %24 = vector.broadcast %23 : vector<1x512xf32> to vector<4x512xf32>
    %25 = arith.mulf %1, %24 : vector<4x512xf32>
    %c0_19 = arith.constant 0 : index
    %c0_20 = arith.constant 0 : index
    %c0_21 = arith.constant 0 : index
    %26 = vector.load %arg9[%c0_19, %c0_20, %c0_21] : memref<1x4x512xf32, #tpu.memory_space<vmem>>, vector<1x4x512xf32>
    %27 = vector.shape_cast %26 : vector<1x4x512xf32> to vector<4x512xf32>
    %28 = vector.shape_cast %25 : vector<4x512xf32> to vector<1x4x512xf32>
    tpu.vector_store %arg9[%c0_19, %c0_20, %c0_21], %28 {strides = array<i32>} : memref<1x4x512xf32, #tpu.memory_space<vmem>>, vector<1x4x512xf32>,
    return
  }
  func.func @transform_0(%arg0: i32, %arg1: i32) -> (i32, i32, i32) {
    %c0_i32 = arith.constant 0 : i32
    %c0_i32_0 = arith.constant 0 : i32
    return %arg0, %c0_i32, %arg1 : i32, i32, i32
  }
  func.func @transform_1(%arg0: i32, %arg1: i32) -> (i32, i32, i32) {
    %c0_i32 = arith.constant 0 : i32
    %c0_i32_0 = arith.constant 0 : i32
    return %arg0, %c0_i32, %arg1 : i32, i32, i32
  }
  func.func @transform_2(%arg0: i32, %arg1: i32) -> (i32, i32) {
    %c0_i32 = arith.constant 0 : i32
    %c0_i32_0 = arith.constant 0 : i32
    %c0_i32_1 = arith.constant 0 : i32
    return %c0_i32, %c0_i32_0 : i32, i32
  }
  func.func @transform_3(%arg0: i32, %arg1: i32) -> (i32, i32) {
    %c0_i32 = arith.constant 0 : i32
    %c0_i32_0 = arith.constant 0 : i32
    %c0_i32_1 = arith.constant 0 : i32
    return %c0_i32, %c0_i32_0 : i32, i32
  }
  func.func @transform_4(%arg0: i32, %arg1: i32) -> (i32, i32) {
    %c0_i32 = arith.constant 0 : i32
    %c0_i32_0 = arith.constant 0 : i32
    %c0_i32_1 = arith.constant 0 : i32
    return %c0_i32, %c0_i32_0 : i32, i32
  }
  func.func @transform_5(%arg0: i32, %arg1: i32) -> (i32, i32) {
    %c0_i32 = arith.constant 0 : i32
    %c0_i32_0 = arith.constant 0 : i32
    %c0_i32_1 = arith.constant 0 : i32
    return %c0_i32, %c0_i32_0 : i32, i32
  }
  func.func @transform_6(%arg0: i32, %arg1: i32) -> (i32, i32) {
    %c0_i32 = arith.constant 0 : i32
    %c0_i32_0 = arith.constant 0 : i32
    %c0_i32_1 = arith.constant 0 : i32
    return %c0_i32, %c0_i32_0 : i32, i32
  }
  func.func @transform_7(%arg0: i32, %arg1: i32) -> (i32, i32, i32) {
    %c0_i32 = arith.constant 0 : i32
    %c0_i32_0 = arith.constant 0 : i32
    return %arg0, %c0_i32, %arg1 : i32, i32, i32
  }
}

</mosaic_0001>

<bundles_post_ra>
// kernel: attention_block_forward.1
= control target key start
LH: loop header
LB: loop body
LE: loop exit
PB: predicated region body
PF: predicated region fallthrough
CT: control target
= control target key end

     0   :  { %s1160_s26 = smov 0   ;;  %s1162_s27 = smov 0   ;;  %s1237_s0 = inlined_call_operand.vmem [shape: f32[2,4,512], index: 0, kind: input, shape index: {}]   ;;  %s1238_s1 = inlined_call_operand.vmem [shape: f32[2,4,512], index: 1, kind: input, shape index: {}]   ;;  %s1239_s2 = inlined_call_operand.vmem [shape: f32[8,4], index: 2, kind: input, shape index: {}]   ;;  %s1240_s3 = inlined_call_operand.vmem [shape: f32[8,4], index: 3, kind: input, shape index: {}]   ;;  %s1241_s4 = inlined_call_operand.vmem [shape: f32[8,1], index: 4, kind: input, shape index: {}]   ;;  %s1242_s5 = inlined_call_operand.vmem [shape: f32[1,8], index: 5, kind: input, shape index: {}]   ;;  %s1243_s6 = inlined_call_operand.<no memory space> [shape: f32[1,1], index: 6, kind: input, shape index: {}]   ;;  %s1244_s7 = inlined_call_operand.vmem [shape: f32[2,4,512], index: 7, kind: output, shape index: {}]  }
   0x1   :  { %v12_v0 = vstv %s1243_s6  ;;  %s1164_s28 = smov 0  }
   0x2   :  { %13 = vst [vmem:[#allocation2] sm:$0x1] %v12_v0 }
   0x3 LB: > { %s31_s6 = sadd.s32 1, %s1109_s27  ;;  %p1010_p0 = scmp.ge.s32.totalorder %s1113_s28, 1  ;;  %s1113_s28 = sphi %s1164_s28, %s19_s28   ;;  %s1109_s27 = sphi %s1162_s27, %s1246_s27   ;;  %s1105_s26 = sphi %s1160_s26, %s1245_s26  }
   0x4   : > { %p33_p1 = scmp.ge.s32.totalorder %s31_s6, 2  ;;  %p277_p2 = scmp.lt.s32.totalorder %s1113_s28, 3 }
   0x6   : > { %s1248_s6 = smov (%p33_p1, %s31_s6), 0  ;;  %p278_p3 = pnand %p1010_p0, %p277_p2 }
   0x7   : > { %p327_p4 = scmp.lt.s32.totalorder (!%p278_p3), %s1105_s26, 1  ;;  %v1115_v1 = vmov (!%p278_p3), 0.0   ;;  %v678_v2 = vld [vmem:[%s1241_s4] sm:$0xff] (!%p278_p3)  ;;  %v1116_v3 = vmov (!%p278_p3), 0   ;;  %vm370_vm0 = vcmask (!%p278_p3), 1043456   ;;  %vm366_vm1 = vcmask (!%p278_p3), 31744  }
   0x8   : > { %281 = sbr.rel (%p278_p3) target bundleno = 500 (0x1f4), region = 48  ;;  %443 = vmatprep.mubr.f32.mxu0 (!%p278_p3), %v1115_v1  ;;  %514 = vmatprep.mubr.f32.mxu1 (!%p278_p3), %v1115_v1  ;;  %v361_v11 = vld [vmem:[%s1240_s3] sm:$0xff] (!%p278_p3)  ;;  %vm703_vm2 = vcmask (!%p278_p3), 64512   ;;  %v699_v29 = vlaneseq (!%p278_p3) }
   0x9   : > { %1070 = vset.pattern.permute.xlu0 (!%p278_p3), %v1116_v3  ;;  %v693_v4 = vld [vmem:[#allocation2] sm:$0x1] (!%p278_p3) }
   0xa   : > { %681 = vperm.xlu0 (!%p278_p3), %1070, %v678_v2   ;;  %v360_v14 = vld [vmem:[%s1239_s2] sm:$0xff] (!%p278_p3)  ;;  %v700_v30 = vshrl.u32 (!%p278_p3), %v699_v29, 7 }
   0xb   : > { %v692_v28 = vld [vmem:[%s1242_s5] sm:$0x1] (!%p278_p3) }
   0xc   : > { %v701_v31 = vsub.s32 (!%p278_p3), 0, %v700_v30 }
   0xe   : > { %696 = vperm.xlu0 (!%p278_p3), %1070, %v693_v4  }
   0xf   : > { %s1250_s26 = smov (!%p327_p4, %s1105_s26), 1 }
  0x10   : > { %s1181_s8 = sshll.u32 %s1250_s26, 4 }
  0x11   : > { %s334_s11 = scalar_lea.vmem %s1237_s0, %s1181_s8  ;;  %s344_s14 = scalar_lea.vmem %s1238_s1, %s1181_s8 }
  0x12   : > { %v1191_v5 = vld [vmem:[%s344_s14] sm:$0xff]  ;;  %v1193_v6 = vld [vmem:[%s344_s14 + $0x8] sm:$0xff]  ;;  %s354_s23 = scalar_lea.vmem %s1244_s7, %s1181_s8 }
  0x13   : > { %v358_v7 = vld [vmem:[%s334_s11] sm:$0xff]  ;;  %v364_v8 = vcombine.high %v1191_v5, %v1191_v5  ;;  %v365_v9 = vcombine.high %v1193_v6, %v1193_v6  ;;  %v359_v10 = vld [vmem:[%s334_s11 + $0x8] sm:$0xff] }
  0x14   : > { %v523_v12 = vcombine.high %v358_v7, %v358_v7  ;;  %v524_v13 = vcombine.high %v359_v10, %v359_v10 }
  0x15   : > { %1017 = vmatprep.subr.msk.mxu0 %vm370_vm0, %v364_v8  ;;  %1020 = vmatprep.subr.msk.mxu1 %vm370_vm0, %v365_v9 }
  0x16   : > { %1018 = vmatpush1.msk.msra.mxu0 %vm370_vm0, %v1191_v5  ;;  %1021 = vmatpush1.msk.msra.mxu1 %vm370_vm0, %v1193_v6 }
  0x17   : > { %1019 = vmatmul.mubr.msk.f32.vlgmr.msra.gmra.mrb[0].mxu0 %vm366_vm1, %v361_v11  ;;  %1022 = vmatmul.mubr.msk.f32.vlgmr.msra.gmra.mrb[0].mxu1 %vm366_vm1, %v361_v11 }
  0x18   : > { %1023 = vmatprep.subr.msk.mxu0 %vm370_vm0, %v523_v12  ;;  %1026 = vmatprep.subr.msk.mxu1 %vm370_vm0, %v524_v13 }
  0x19   : > { %1024 = vmatpush1.msk.msra.mxu0 %vm370_vm0, %v358_v7  ;;  %1027 = vmatpush1.msk.msra.mxu1 %vm370_vm0, %v359_v10 }
  0x1a   : > { %600 = vmatprep.mubr.f32.mxu0 %v1115_v1  ;;  %671 = vmatprep.mubr.f32.mxu1 %v1115_v1 }
  0x1f   : > { %1025 = vmatmul.mubr.msk.f32.vlgmr.msra.gmra.mrb[0].mxu0 %vm366_vm1, %v360_v14  ;;  %1028 = vmatmul.mubr.msk.f32.vlgmr.msra.gmra.mrb[0].mxu1 %vm366_vm1, %v360_v14 }
  0x20   : > { %771 = vmatprep.mubr.f32.mxu0 %v1115_v1  ;;  %842 = vmatprep.mubr.f32.mxu1 %v1115_v1 }
  0x89   : > { %v682_v15 = vpop.permute.xlu0 %681 }
  0x8d   : > { %v697_v32 = vpop.permute.xlu0 %696 }
  0x8e   : > { %v702_v33 = vrot.slane %v697_v32, %v701_v31 }
  0xf2   : > { %v602_v16 = vpop.f32.mrb[0].mxu0  ;;  %v673_v17 = vpop.f32.mrb[0].mxu1 }
  0xf3   : > { %v684_v18 = vadd.f32 %v682_v15, %v602_v16  ;;  %v686_v19 = vadd.f32 %v682_v15, %v673_v17  ;;  %v604_v20 = vpop.f32.mrb[1].mxu0  ;;  %v675_v21 = vpop.f32.mrb[1].mxu1 }
  0xf4   : > { %v685_v22 = vadd.f32 %v682_v15, %v604_v20  ;;  %v687_v23 = vadd.f32 %v682_v15, %v675_v21 }
  0xf5   : > { %v688_v26 = vmax.f32 %v684_v18, 0.0  ;;  %v690_v27 = vmax.f32 %v686_v19, 0.0 }
  0xf6   : > { %v689_v24 = vmax.f32 %v685_v22, 0.0  ;;  %v691_v25 = vmax.f32 %v687_v23, 0.0 }
  0xf8   : > { %707 = vmatprep.subr.mxu0 %v689_v24  ;;  %778 = vmatprep.subr.mxu1 %v691_v25 }
  0xf9   : > { %708 = vmatpush1.msra.mxu0 %v688_v26  ;;  %779 = vmatpush1.msra.mxu1 %v690_v27 }
  0xfa   : > { %1029 = vmatmul.mubr.msk.f32.vlgmr.msra.gmra.mrb[2].mxu0 %vm703_vm2, %v692_v28  ;;  %1030 = vmatmul.mubr.msk.f32.vlgmr.msra.gmra.mrb[2].mxu1 %vm703_vm2, %v692_v28 }
 0x1cd   : > { %v773_v34 = vpop.f32.mrb[2].mxu0  ;;  %v844_v35 = vpop.f32.mrb[2].mxu1 }
 0x1ce   : > { %v774_v36 = vadd.f32 %v773_v34, %v702_v33  ;;  %v845_v37 = vadd.f32 %v844_v35, %v702_v33  ;;  %v775_v38 = vpop.f32.mrb[3].mxu0  ;;  %v846_v39 = vpop.f32.mrb[3].mxu1 }
 0x1cf   : > { %v776_v40 = vadd.f32 %v775_v38, %v702_v33  ;;  %v847_v41 = vadd.f32 %v846_v39, %v702_v33 }
 0x1d0   : > { %v1031_v42 = vmul.f32 -1.442695, %v774_v36  ;;  %v1033_v43 = vmul.f32 -1.442695, %v845_v37 }
 0x1d1   : > { %v1032_v44 = vmul.f32 -1.442695, %v776_v40  ;;  %v1034_v45 = vmul.f32 -1.442695, %v847_v41 }
 0x1d2   : > { %1075 = vpow2.f32 %v1031_v42 }
 0x1d3   : > { %1077 = vpow2.f32 %v1033_v43 }
 0x1d4   : > { %1079 = vpow2.f32 %v1032_v44 }
 0x1d5   : > { %1081 = vpow2.f32 %v1034_v45 }
 0x1dc   : > { %v1076_v46 = vpop.eup %1075 }
 0x1dd   : > { %v1078_v47 = vpop.eup %1077  ;;  %v861_v48 = vadd.f32 1.0, %v1076_v46 }
 0x1de   : > { %v1080_v49 = vpop.eup %1079  ;;  %v863_v50 = vadd.f32 1.0, %v1078_v47 }
 0x1df   : > { %v1082_v51 = vpop.eup %1081  ;;  %1083 = vrcp.f32 %v861_v48  ;;  %v862_v52 = vadd.f32 1.0, %v1080_v49 }
 0x1e0   : > { %1085 = vrcp.f32 %v863_v50  ;;  %v864_v53 = vadd.f32 1.0, %v1082_v51 }
 0x1e1   : > { %1087 = vrcp.f32 %v862_v52 }
 0x1e2   : > { %1089 = vrcp.f32 %v864_v53 }
 0x1e9   : > { %v1084_v54 = vpop.eup %1083 }
 0x1ea   : > { %v1086_v55 = vpop.eup %1085  ;;  %v876_v56 = vrot.slane %v1084_v54, %v701_v31 }
 0x1eb   : > { %v1088_v57 = vpop.eup %1087  ;;  %v884_v58 = vrot.slane %v1086_v55, %v701_v31 }
 0x1ec   : > { %v1090_v59 = vpop.eup %1089  ;;  %v880_v60 = vrot.slane %v1088_v57, %v701_v31 }
 0x1ed   : > { %v888_v61 = vrot.slane %v1090_v59, %v701_v31 }
 0x1ee   : > { %v893_v62 = vcombine.low %v876_v56, %v880_v60 }
 0x1ef   : > { %v894_v63 = vcombine.low %v884_v58, %v888_v61 }
 0x1f0   : > { %v897_v0 = vmul.f32 %v893_v62, %v1191_v5 }
 0x1f1   : > { %v898_v1 = vmul.f32 %v894_v63, %v1193_v6 }
 0x1f2   : > { %899 = vst [vmem:[%s354_s23] sm:$0xff] %v897_v0 }
 0x1f3   : > { %900 = vst [vmem:[%s354_s23 + $0x8] sm:$0xff] %v898_v1 }
 0x1f4 PF: > { %s19_s28 = sadd.s32 1, %s1113_s28   ;;  %s1245_s26 = smov %s1109_s27 }
 0x1f5   : > { %p16_p5 = scmp.ge.s32.totalorder %s19_s28, 4   ;;  %s1246_s27 = smov %s1248_s6 }
 0x1f7   :  { %18 = sbr.rel (!%p16_p5) target bundleno = 3 (0x3), region = 81 }

</bundles_post_ra>
